<compile_context>
chip_gen: v7x
topology: tpu7x:2x2x1
jax: 0.10.0
libtpu: 0.0.40
codegen_flags: <defaults>
</compile_context>

<pallas_src>
import math

import jax
import jax.numpy as jnp
from jax.experimental import pallas as pl
from jax.experimental.pallas import tpu as pltpu


# ----------------------------- kernel body ----------------------------------

def _cluster_attn_kernel(w_ref, p_ref, o_ref, acc_ref):
    # w_ref  : (TB, TC, 1)  f32   gathered softmax weights for this tile
    # p_ref  : (TB, TC, T)  f32/bf16  per-cluster prediction stream
    # o_ref  : (TB, T)      out dtype
    # acc_ref: (TB, T)      f32   accumulator, resident across the cluster axis
    @pl.when(pl.program_id(1) == 0)
    def _init():
        acc_ref[...] = jnp.zeros_like(acc_ref)

    w = w_ref[...]                                    # (TB, TC, 1) f32
    v = p_ref[...].astype(jnp.float32)                # (TB, TC, T)
    # Per-cluster scale is a clean lane-broadcast VPU multiply; the sum over the
    # cluster (sublane) axis is one cross-sublane XLU reduce.
    acc_ref[...] += jnp.sum(w * v, axis=1)

    @pl.when(pl.program_id(1) == pl.num_programs(1) - 1)
    def _finalize():
        o_ref[...] = acc_ref[...].astype(o_ref.dtype)


# ----------------------------- tile sizing ----------------------------------

_VMEM_BUDGET = 24 << 20      # target live footprint; < the 32 MiB scoped limit below
_SMALL_TOTAL = 1 << 20       # below this, one full-extent block (per-step overhead dominates)


def _round_up(x, m):
    return (x + m - 1) // m * m


def _per_row_vmem(ct, T, itemsize):
    """Padded VMEM bytes per batch row: 2x-buffered preds/weights/out + f32 acc."""
    ct_pad = _round_up(ct, 8)
    lanes_t = _round_up(T, 128)
    return (2 * ct_pad * lanes_t * itemsize     # preds blocks (double-buffered)
            + 2 * ct_pad * 128 * 4              # (bt, ct, 1) f32 weights blocks
            + 2 * lanes_t * itemsize            # output blocks
            + lanes_t * 4)                      # f32 accumulator scratch


def _choose_tiles(B, C, T, itemsize, batch_tile=None, cluster_tile=None):
    # --- cluster-axis tile ---------------------------------------------------
    if cluster_tile is None:
        ct = C
        if 8 * _per_row_vmem(C, T, itemsize) > _VMEM_BUDGET:
            # Largest multiple-of-8 divisor of C whose 8-row block fits.
            for d in range((C // 8) * 8, 7, -8):
                if C % d == 0 and 8 * _per_row_vmem(d, T, itemsize) <= _VMEM_BUDGET:
                    ct = d
                    break
            # TODO(synk): add T-axis tiling for pathological T where no divisor of C fits.
    else:
        ct = cluster_tile
    assert ct == C or (C % ct == 0 and ct % 8 == 0), (
        "cluster_tile must equal C, or divide C and be a multiple of 8")

    # --- batch-axis tile -----------------------------------------------------
    per_row = _per_row_vmem(ct, T, itemsize)
    if batch_tile is None:
        total_hbm = B * C * T * itemsize
        if total_hbm <= _SMALL_TOTAL and B * per_row <= _VMEM_BUDGET:
            bt = B                                   # tiny problem: single block, no grid overhead
        else:
            bt = min(_VMEM_BUDGET // max(per_row, 1),
                     pl.cdiv(B, 2))                  # >= 2 steps so v7x megacore can split
            bt = max(8, (bt // 8) * 8)
            bt = min(bt, B)
    else:
        bt = batch_tile
    assert bt == B or bt % 8 == 0, "batch_tile must equal B or be a multiple of 8"
    return bt, ct


# ----------------------------- wrapper ---------------------------------------

def cluster_aware_attention(preds, cluster_idx, emb_table, keep_dim=True,
                            batch_tile=None, cluster_tile=None):
    """preds: (B, C, T); cluster_idx: (B, 1) int; emb_table: (C, E)."""
    B, C, T = preds.shape
    assert cluster_idx.shape == (B, 1), "ATTENTION: keep `cluster_idx` last dim = 1"
    assert emb_table.shape[0] == C
    E = emb_table.shape[1]
    itemsize = preds.dtype.itemsize

    # --- Hoisted, batch-independent attention and per-row gather (XLA) -------
    # P = softmax(W W^T / sqrt(E)) is (C, C); weights = P[idx] is (B, C).
    # O(C^2 E + B*C) — negligible next to the preds stream the kernel is bound by.
    w32 = emb_table.astype(jnp.float32)
    scores = jnp.dot(w32, w32.T, preferred_element_type=jnp.float32) / math.sqrt(E)
    attn = jax.nn.softmax(scores, axis=-1)                       # (C, C), rows sum to 1
    idx = cluster_idx[:, 0].astype(jnp.int32)
    weights = jnp.take(attn, idx, axis=0)                        # (B, C) f32
    # NOTE: out-of-range indices clamp (JAX gather semantics); nn.Embedding would raise.
    weights3d = weights[:, :, None]                              # (B, C, 1): lane dim full

    bt, ct = _choose_tiles(B, C, T, itemsize, batch_tile, cluster_tile)
    grid = (pl.cdiv(B, bt), pl.cdiv(C, ct))

    out2d = pl.pallas_call(
        _cluster_attn_kernel,
        out_shape=jax.ShapeDtypeStruct((B, T), preds.dtype),
        grid=grid,
        in_specs=[
            pl.BlockSpec((bt, ct, 1), lambda i, j: (i, j, 0)),   # weights
            pl.BlockSpec((bt, ct, T), lambda i, j: (i, j, 0)),   # preds stream
        ],
        out_specs=pl.BlockSpec((bt, T), lambda i, j: (i, 0)),    # resident across j
        scratch_shapes=[pltpu.VMEM((bt, T), jnp.float32)],
        compiler_params=pltpu.CompilerParams(
            dimension_semantics=("parallel", "arbitrary"),
            vmem_limit_bytes=32 << 20),
        cost_estimate=pl.CostEstimate(
            flops=2 * B * C * T,
            transcendentals=0,
            bytes_accessed=(B * C * T + B * T) * itemsize + B * C * 4),
    )(weights3d, preds)

    return out2d[:, None, :] if keep_dim else out2d


# ----------------------------- pure-JAX reference ----------------------------

def _reference(preds, cluster_idx, emb_table, keep_dim=True):
    """Mirrors the PyTorch forward pass exactly."""
    B, C, T = preds.shape
    E = emb_table.shape[1]
    q = emb_table[cluster_idx[:, 0]][:, None, :]                     # (B, 1, E)
    k = jnp.broadcast_to(emb_table[None], (B, C, E))                 # (B, C, E)
    scores = jnp.einsum("bqe,bke->bqk", q, k) / math.sqrt(E)         # (B, 1, C)
    attn = jax.nn.softmax(scores, axis=-1)
    out = jnp.einsum("bqk,bkt->bqt", attn, preds)                    # (B, 1, T)
    return out if keep_dim else out[:, 0, :]


# ----------------------------- demo / self-test -------------------------------

if __name__ == "__main__":
    key = jax.random.PRNGKey(0)

    # Case 1: the module's nominal small shapes -> single full-extent block.
    B, C, E, T = 16, 8, 32, 8
    k1, k2, k3, key = jax.random.split(key, 4)
    emb_table = jax.random.normal(k1, (C, E), dtype=jnp.float32)     # nn.Embedding ~ N(0,1)
    preds = jax.random.normal(k2, (B, C, T), dtype=jnp.float32)
    cluster_idx = jax.random.randint(k3, (B, 1), 0, C, dtype=jnp.int32)

    out = cluster_aware_attention(preds, cluster_idx, emb_table, keep_dim=True)
    out = jax.block_until_ready(out)
    ref = _reference(preds, cluster_idx, emb_table, keep_dim=True)
    assert out.shape == (B, 1, T)
    assert jnp.allclose(out, ref, atol=1e-5, rtol=1e-5), "case 1 mismatch vs reference"

    # Case 2: force the tiled path (2 batch tiles x 2 cluster tiles) to exercise
    # the parallel batch grid and the f32 accumulator over the cluster axis.
    B2, C2, E2, T2 = 32, 16, 32, 8
    k1, k2, k3, key = jax.random.split(key, 4)
    emb2 = jax.random.normal(k1, (C2, E2), dtype=jnp.float32)
    preds2 = jax.random.normal(k2, (B2, C2, T2), dtype=jnp.float32)
    idx2 = jax.random.randint(k3, (B2, 1), 0, C2, dtype=jnp.int32)

    out2 = cluster_aware_attention(preds2, idx2, emb2, keep_dim=False,
                                   batch_tile=16, cluster_tile=8)
    out2 = jax.block_until_ready(out2)
    ref2 = _reference(preds2, idx2, emb2, keep_dim=False)
    assert out2.shape == (B2, T2)
    assert jnp.allclose(out2, ref2, atol=1e-5, rtol=1e-5), "case 2 mismatch vs reference"

    print("KERNEL_OK")
</pallas_src>

<mosaic_0001>
module attributes {stable_mosaic.version = 11 : i64} {
  func.func @_cluster_attn_kernel(%arg0: i32, %arg1: i32, %arg2: memref<16x8x1xf32, #tpu.memory_space<vmem>>, %arg3: memref<16x8x8xf32, #tpu.memory_space<vmem>>, %arg4: memref<16x8xf32, #tpu.memory_space<vmem>>, %arg5: memref<16x8xf32, #tpu.memory_space<vmem>>) attributes {dimension_semantics = [#tpu.dimension_semantics<parallel>, #tpu.dimension_semantics<arbitrary>], iteration_bounds = array<i64: 1, 1>, scalar_prefetch = 0 : i64, scratch_operands = 1 : i64, tpu.core_type = #tpu.core_type<tc>, window_params = [{transform_indices = @transform_0, window_bounds = array<i64: 16, 8, 1>}, {transform_indices = @transform_1, window_bounds = array<i64: 16, 8, 8>}, {transform_indices = @transform_2, window_bounds = array<i64: 16, 8>}]} {
    %c0_i32 = arith.constant 0 : i32
    %0 = arith.cmpi eq, %arg1, %c0_i32 : i32
    %1 = arith.extui %0 : i1 to i32
    %c0_i32_0 = arith.constant 0 : i32
    %2 = arith.cmpi ne, %1, %c0_i32_0 : i32
    scf.if %2 {
      %cst_12 = arith.constant 0.000000e+00 : f32
      %14 = vector.broadcast %cst_12 : f32 to vector<16x8xf32>
      %c0_13 = arith.constant 0 : index
      %c0_14 = arith.constant 0 : index
      %15 = vector.load %arg5[%c0_13, %c0_14] : memref<16x8xf32, #tpu.memory_space<vmem>>, vector<16x8xf32>
      tpu.vector_store %arg5[%c0_13, %c0_14], %14 {strides = array<i32>} : memref<16x8xf32, #tpu.memory_space<vmem>>, vector<16x8xf32>,
    } else {
    }
    %c0 = arith.constant 0 : index
    %c0_1 = arith.constant 0 : index
    %c0_2 = arith.constant 0 : index
    %3 = vector.load %arg2[%c0, %c0_1, %c0_2] : memref<16x8x1xf32, #tpu.memory_space<vmem>>, vector<16x8x1xf32>
    %c0_3 = arith.constant 0 : index
    %c0_4 = arith.constant 0 : index
    %c0_5 = arith.constant 0 : index
    %4 = vector.load %arg3[%c0_3, %c0_4, %c0_5] : memref<16x8x8xf32, #tpu.memory_space<vmem>>, vector<16x8x8xf32>
    %c0_6 = arith.constant 0 : index
    %c0_7 = arith.constant 0 : index
    %5 = vector.load %arg5[%c0_6, %c0_7] : memref<16x8xf32, #tpu.memory_space<vmem>>, vector<16x8xf32>
    %6 = vector.broadcast %3 : vector<16x8x1xf32> to vector<16x8x8xf32>
    %7 = arith.mulf %6, %4 : vector<16x8x8xf32>
    %cst = arith.constant dense<0.000000e+00> : vector<16x8xf32>
    %8 = vector.multi_reduction <add>, %7, %cst [1] : vector<16x8x8xf32> to vector<16x8xf32>
    %9 = arith.addf %5, %8 : vector<16x8xf32>
    %c0_8 = arith.constant 0 : index
    %c0_9 = arith.constant 0 : index
    %10 = vector.load %arg5[%c0_8, %c0_9] : memref<16x8xf32, #tpu.memory_space<vmem>>, vector<16x8xf32>
    tpu.vector_store %arg5[%c0_8, %c0_9], %9 {strides = array<i32>} : memref<16x8xf32, #tpu.memory_space<vmem>>, vector<16x8xf32>,
    %c0_i32_10 = arith.constant 0 : i32
    %11 = arith.cmpi eq, %arg1, %c0_i32_10 : i32
    %12 = arith.extui %11 : i1 to i32
    %c0_i32_11 = arith.constant 0 : i32
    %13 = arith.cmpi ne, %12, %c0_i32_11 : i32
    scf.if %13 {
      %c0_12 = arith.constant 0 : index
      %c0_13 = arith.constant 0 : index
      %14 = vector.load %arg5[%c0_12, %c0_13] : memref<16x8xf32, #tpu.memory_space<vmem>>, vector<16x8xf32>
      %c0_14 = arith.constant 0 : index
      %c0_15 = arith.constant 0 : index
      %15 = vector.load %arg4[%c0_14, %c0_15] : memref<16x8xf32, #tpu.memory_space<vmem>>, vector<16x8xf32>
      tpu.vector_store %arg4[%c0_14, %c0_15], %14 {strides = array<i32>} : memref<16x8xf32, #tpu.memory_space<vmem>>, vector<16x8xf32>,
    } else {
    }
    return
  }
  func.func @transform_0(%arg0: i32, %arg1: i32) -> (i32, i32, i32) {
    %c0_i32 = arith.constant 0 : i32
    %c0_i32_0 = arith.constant 0 : i32
    return %arg0, %arg1, %c0_i32 : i32, i32, i32
  }
  func.func @transform_1(%arg0: i32, %arg1: i32) -> (i32, i32, i32) {
    %c0_i32 = arith.constant 0 : i32
    %c0_i32_0 = arith.constant 0 : i32
    return %arg0, %arg1, %c0_i32 : i32, i32, i32
  }
  func.func @transform_2(%arg0: i32, %arg1: i32) -> (i32, i32) {
    %c0_i32 = arith.constant 0 : i32
    %c0_i32_0 = arith.constant 0 : i32
    return %arg0, %c0_i32 : i32, i32
  }
}

</mosaic_0001>

<bundles_post_ra>
// kernel: tpu_custom_call.1
= control target key start
LH: loop header
LB: loop body
LE: loop exit
PB: predicated region body
PF: predicated region fallthrough
CT: control target
= control target key end

     0   :  { %v319_v0 = vmov 0   ;;  %vm15_vm0 = vcmask 64512   ;;  %v320_v17 = vmov 0.0   ;;  %vm277_vm1 = vcmask 1041409   ;;  %s484_s0 = inlined_call_operand.vmem [shape: f32[16,8,1], index: 0, kind: input, shape index: {}]   ;;  %s485_s1 = inlined_call_operand.vmem [shape: f32[16,8,8], index: 1, kind: input, shape index: {}]   ;;  %s486_s2 = inlined_call_operand.vmem [shape: f32[16,8], index: 2, kind: output, shape index: {}]  }
   0x1   :  { %318 = vset.pattern.permute.xlu1 %v319_v0  ;;  %317 = vset.pattern.permute.xlu0 %v319_v0  ;;  %v26_v1 = vld [vmem:[%s484_s0 + $0x40] sm:$0xff]  ;;  %v27_v3 = vld [vmem:[%s484_s0 + $0x48] sm:$0xff]  ;;  %v28_v5 = vld [vmem:[%s484_s0 + $0x50] sm:$0xff]  ;;  %17 = vst.msk [vmem:[#allocation2 + $0x8] sm:$0xff] %vm15_vm0, %v320_v17  ;;  %vm279_vm2 = vcmask 1042434   ;;  %vm281_vm3 = vcmask 1043459  }
   0x2   :  { %v18_v2 = vld [vmem:[%s484_s0] sm:$0xff]  ;;  %94 = vperm.xlu1 %318, %v26_v1   ;;  %v19_v4 = vld [vmem:[%s484_s0 + $0x8] sm:$0xff]  ;;  %v20_v6 = vld [vmem:[%s484_s0 + $0x10] sm:$0xff]  ;;  %16 = vst.msk [vmem:[#allocation2] sm:$0xff] %vm15_vm0, %v320_v17  ;;  %vm283_vm4 = vcmask 1044484   ;;  %vm285_vm5 = vcmask 1045509  }
   0x3   :  { %54 = vperm.xlu0 %317, %v18_v2   ;;  %v29_v7 = vld [vmem:[%s484_s0 + $0x58] sm:$0xff]  ;;  %v30_v9 = vld [vmem:[%s484_s0 + $0x60] sm:$0xff]  ;;  %v31_v11 = vld [vmem:[%s484_s0 + $0x68] sm:$0xff]  ;;  %vm287_vm6 = vcmask 1046534   ;;  %vm289_vm7 = vcmask 1047559  }
   0x4   :  { %v21_v8 = vld [vmem:[%s484_s0 + $0x18] sm:$0xff]  ;;  %v22_v10 = vld [vmem:[%s484_s0 + $0x20] sm:$0xff]  ;;  %v23_v12 = vld [vmem:[%s484_s0 + $0x28] sm:$0xff] }
   0x5   :  { %v32_v13 = vld [vmem:[%s484_s0 + $0x70] sm:$0xff]  ;;  %v33_v15 = vld [vmem:[%s484_s0 + $0x78] sm:$0xff]  ;;  %v42_v18 = vld [vmem:[%s485_s1 + $0x40] sm:$0xff] }
   0x6   :  { %99 = vperm.xlu1 %318, %v27_v3   ;;  %v24_v14 = vld [vmem:[%s484_s0 + $0x30] sm:$0xff]  ;;  %v25_v16 = vld [vmem:[%s484_s0 + $0x38] sm:$0xff]  ;;  %v34_v19 = vld [vmem:[%s485_s1] sm:$0xff] }
   0x7   :  { %59 = vperm.xlu0 %317, %v19_v4   ;;  %v43_v24 = vld [vmem:[%s485_s1 + $0x48] sm:$0xff]  ;;  %v44_v36 = vld [vmem:[%s485_s1 + $0x50] sm:$0xff]  ;;  %v45_v48 = vld [vmem:[%s485_s1 + $0x58] sm:$0xff] }
   0x8   :  { %v35_v25 = vld [vmem:[%s485_s1 + $0x8] sm:$0xff]  ;;  %v36_v37 = vld [vmem:[%s485_s1 + $0x10] sm:$0xff]  ;;  %v37_v49 = vld [vmem:[%s485_s1 + $0x18] sm:$0xff] }
   0x9   :  { %v46_v60 = vld [vmem:[%s485_s1 + $0x60] sm:$0xff] }
   0xa   :  { %104 = vperm.xlu1 %318, %v28_v5   ;;  %v38_v61 = vld [vmem:[%s485_s1 + $0x20] sm:$0xff] }
   0xb   :  { %64 = vperm.xlu0 %317, %v20_v6  }
   0xe   :  { %109 = vperm.xlu1 %318, %v29_v7  }
   0xf   :  { %69 = vperm.xlu0 %317, %v21_v8  }
  0x12   :  { %114 = vperm.xlu1 %318, %v30_v9  }
  0x13   :  { %74 = vperm.xlu0 %317, %v22_v10  }
  0x16   :  { %119 = vperm.xlu1 %318, %v31_v11  }
  0x17   :  { %79 = vperm.xlu0 %317, %v23_v12  }
  0x1a   :  { %124 = vperm.xlu1 %318, %v32_v13  }
  0x1b   :  { %84 = vperm.xlu0 %317, %v24_v14   ;;  %v47_v14 = vld [vmem:[%s485_s1 + $0x68] sm:$0xff] }
  0x1e   :  { %129 = vperm.xlu1 %318, %v33_v15   ;;  %v39_v15 = vld [vmem:[%s485_s1 + $0x28] sm:$0xff] }
  0x1f   :  { %89 = vperm.xlu0 %317, %v25_v16  }
  0x81   :  { %v95_v20 = vpop.permute.xlu1 %94 }
  0x82   :  { %v55_v21 = vpop.permute.xlu0 %54  ;;  %v140_v22 = vmul.f32 %v95_v20, %v42_v18 }
  0x83   :  { %v132_v23 = vmul.f32 %v55_v21, %v34_v19 }
  0x84   :  { %v205_v26 = vsel %vm15_vm0, %v140_v22, 0.0 }
  0x85   :  { %v149_v27 = vsel %vm15_vm0, %v132_v23, 0.0  ;;  %v206_v28 = vrot.slane %v205_v26, 4  ;;  %v100_v30 = vpop.permute.xlu1 %99 }
  0x86   :  { %v150_v29 = vrot.slane %v149_v27, 4  ;;  %v60_v31 = vpop.permute.xlu0 %59  ;;  %v141_v32 = vmul.f32 %v100_v30, %v43_v24 }
  0x87   :  { %v133_v33 = vmul.f32 %v60_v31, %v35_v25  ;;  %v207_v38 = vadd.f32 %v206_v28, %v205_v26 }
  0x88   :  { %v212_v34 = vsel %vm15_vm0, %v141_v32, 0.0  ;;  %v151_v39 = vadd.f32 %v150_v29, %v149_v27 }
  0x89   :  { %v156_v35 = vsel %vm15_vm0, %v133_v33, 0.0  ;;  %v213_v40 = vrot.slane %v212_v34, 4  ;;  %v105_v42 = vpop.permute.xlu1 %104  ;;  %v208_v50 = vrot.slane %v207_v38, 2 }
  0x8a   :  { %v157_v41 = vrot.slane %v156_v35, 4  ;;  %v65_v43 = vpop.permute.xlu0 %64  ;;  %v142_v46 = vmul.f32 %v105_v42, %v44_v36  ;;  %v152_v51 = vrot.slane %v151_v39, 2  ;;  %v40_v36 = vld [vmem:[%s485_s1 + $0x30] sm:$0xff] }
  0x8b   :  { %v214_v44 = vadd.f32 %v213_v40, %v212_v34  ;;  %v134_v47 = vmul.f32 %v65_v43, %v36_v37  ;;  %v209_v62 = vadd.f32 %v208_v50, %v207_v38  ;;  %v48_v34 = vld [vmem:[%s485_s1 + $0x70] sm:$0xff] }
  0x8c   :  { %v158_v45 = vadd.f32 %v157_v41, %v156_v35  ;;  %v219_v58 = vsel %vm15_vm0, %v142_v46, 0.0  ;;  %v153_v63 = vadd.f32 %v152_v51, %v151_v39 }
  0x8d   :  { %v110_v52 = vpop.permute.xlu1 %109  ;;  %v215_v56 = vrot.slane %v214_v44, 2  ;;  %v163_v59 = vsel %vm15_vm0, %v134_v47, 0.0  ;;  %v220_v4 = vrot.slane %v219_v58, 4  ;;  %v210_v16 = vrot.slane %v209_v62, 1 }
  0x8e   :  { %v70_v53 = vpop.permute.xlu0 %69  ;;  %v143_v54 = vmul.f32 %v110_v52, %v45_v48  ;;  %v159_v57 = vrot.slane %v158_v45, 2  ;;  %v164_v5 = vrot.slane %v163_v59, 4  ;;  %v154_v17 = vrot.slane %v153_v63, 1 }
  0x8f   :  { %v135_v55 = vmul.f32 %v70_v53, %v37_v49  ;;  %v216_v8 = vadd.f32 %v215_v56, %v214_v44  ;;  %v221_v20 = vadd.f32 %v220_v4, %v219_v58  ;;  %v440_v38 = vadd.f32 %v210_v16, %v209_v62  ;;  %v41_v56 = vld [vmem:[%s485_s1 + $0x38] sm:$0xff] }
  0x90   :  { %v226_v0 = vsel %vm15_vm0, %v143_v54, 0.0  ;;  %v160_v9 = vadd.f32 %v159_v57, %v158_v45  ;;  %v165_v21 = vadd.f32 %v164_v5, %v163_v59  ;;  %v442_v39 = vadd.f32 %v154_v17, %v153_v63  ;;  %v49_v54 = vld [vmem:[%s485_s1 + $0x78] sm:$0xff] }
  0x91   :  { %v170_v1 = vsel %vm15_vm0, %v135_v55, 0.0  ;;  %v115_v2 = vpop.permute.xlu1 %114  ;;  %v227_v10 = vrot.slane %v226_v0, 4  ;;  %v217_v24 = vrot.slane %v216_v8, 1  ;;  %v222_v40 = vrot.slane %v221_v20, 2 }
  0x92   :  { %v75_v3 = vpop.permute.xlu0 %74  ;;  %v144_v6 = vmul.f32 %v115_v2, %v46_v60  ;;  %v171_v11 = vrot.slane %v170_v1, 4  ;;  %v161_v25 = vrot.slane %v160_v9, 1  ;;  %v166_v41 = vrot.slane %v165_v21, 2 }
  0x93   :  { %v136_v7 = vmul.f32 %v75_v3, %v38_v61  ;;  %v228_v28 = vadd.f32 %v227_v10, %v226_v0  ;;  %v444_v42 = vadd.f32 %v217_v24, %v216_v8  ;;  %v223_v58 = vadd.f32 %v222_v40, %v221_v20 }
  0x94   :  { %v233_v12 = vsel %vm15_vm0, %v144_v6, 0.0  ;;  %v172_v29 = vadd.f32 %v171_v11, %v170_v1  ;;  %v446_v43 = vadd.f32 %v161_v25, %v160_v9  ;;  %v167_v59 = vadd.f32 %v166_v41, %v165_v21 }
  0x95   :  { %v177_v13 = vsel %vm15_vm0, %v136_v7, 0.0  ;;  %v120_v18 = vpop.permute.xlu1 %119  ;;  %v234_v22 = vrot.slane %v233_v12, 4  ;;  %v229_v46 = vrot.slane %v228_v28, 2  ;;  %v291_v40 = vsel %vm277_vm1, %v444_v42, %v440_v38 }
  0x96   :  { %v80_v19 = vpop.permute.xlu0 %79  ;;  %v178_v23 = vrot.slane %v177_v13, 4  ;;  %v145_v26 = vmul.f32 %v120_v18, %v47_v14  ;;  %v173_v47 = vrot.slane %v172_v29, 2  ;;  %v224_v14 = vrot.slane %v223_v58, 1 }
  0x97   :  { %v137_v27 = vmul.f32 %v80_v19, %v39_v15  ;;  %v235_v30 = vadd.f32 %v234_v22, %v233_v12  ;;  %v230_v2 = vadd.f32 %v229_v46, %v228_v28  ;;  %v168_v15 = vrot.slane %v167_v59, 1 }
  0x98   :  { %v179_v31 = vadd.f32 %v178_v23, %v177_v13  ;;  %v240_v32 = vsel %vm15_vm0, %v145_v26, 0.0  ;;  %v174_v3 = vadd.f32 %v173_v47, %v172_v29  ;;  %v278_v41 = vsel %vm277_vm1, %v446_v43, %v442_v39 }
  0x99   :  { %v184_v33 = vsel %vm15_vm0, %v137_v27, 0.0  ;;  %v125_v35 = vpop.permute.xlu1 %124  ;;  %v241_v44 = vrot.slane %v240_v32, 4  ;;  %v236_v50 = vrot.slane %v235_v30, 2  ;;  %v231_v18 = vrot.slane %v230_v2, 1 }
  0x9a   :  { %v85_v37 = vpop.permute.xlu0 %84  ;;  %v185_v45 = vrot.slane %v184_v33, 4  ;;  %v146_v48 = vmul.f32 %v125_v35, %v48_v34  ;;  %v180_v51 = vrot.slane %v179_v31, 2  ;;  %v175_v19 = vrot.slane %v174_v3, 1 }
  0x9b   :  { %v138_v49 = vmul.f32 %v85_v37, %v40_v36  ;;  %v242_v52 = vadd.f32 %v241_v44, %v240_v32  ;;  %v237_v6 = vadd.f32 %v236_v50, %v235_v30  ;;  %v225_v30 = vadd.f32 %v224_v14, %v223_v58  ;;  %v51_v58 = vld [vmem:[#allocation2 + $0x8] sm:$0xff] }
  0x9c   :  { %v186_v53 = vadd.f32 %v185_v45, %v184_v33  ;;  %v247_v60 = vsel %vm15_vm0, %v146_v48, 0.0  ;;  %v181_v7 = vadd.f32 %v180_v51, %v179_v31  ;;  %v169_v31 = vadd.f32 %v168_v15, %v167_v59 }
  0x9d   :  { %v130_v55 = vpop.permute.xlu1 %129  ;;  %v191_v61 = vsel %vm15_vm0, %v138_v49, 0.0  ;;  %v243_v62 = vrot.slane %v242_v52, 2  ;;  %v248_v0 = vrot.slane %v247_v60, 4  ;;  %v238_v22 = vrot.slane %v237_v6, 1 }
  0x9e   :  { %v90_v57 = vpop.permute.xlu0 %89  ;;  %v187_v63 = vrot.slane %v186_v53, 2  ;;  %v192_v1 = vrot.slane %v191_v61, 4  ;;  %v147_v4 = vmul.f32 %v130_v55, %v49_v54  ;;  %v182_v23 = vrot.slane %v181_v7, 1 }
  0x9f   :  { %v139_v5 = vmul.f32 %v90_v57, %v41_v56  ;;  %v249_v8 = vadd.f32 %v248_v0, %v247_v60  ;;  %v244_v10 = vadd.f32 %v243_v62, %v242_v52  ;;  %v232_v34 = vadd.f32 %v231_v18, %v230_v2  ;;  %v50_v60 = vld [vmem:[#allocation2] sm:$0xff] }
  0xa0   :  { %v193_v9 = vadd.f32 %v192_v1, %v191_v61  ;;  %v188_v11 = vadd.f32 %v187_v63, %v186_v53  ;;  %v254_v12 = vsel %vm15_vm0, %v147_v4, 0.0  ;;  %v176_v35 = vadd.f32 %v175_v19, %v174_v3 }
  0xa1   :  { %v198_v13 = vsel %vm15_vm0, %v139_v5, 0.0  ;;  %v250_v16 = vrot.slane %v249_v8, 2  ;;  %v255_v20 = vrot.slane %v254_v12, 4  ;;  %v245_v26 = vrot.slane %v244_v10, 1 }
  0xa2   :  { %v194_v17 = vrot.slane %v193_v9, 2  ;;  %v199_v21 = vrot.slane %v198_v13, 4  ;;  %v189_v27 = vrot.slane %v188_v11, 1  ;;  %v239_v44 = vadd.f32 %v238_v22, %v237_v6 }
  0xa3   :  { %v251_v24 = vadd.f32 %v250_v16, %v249_v8  ;;  %v256_v28 = vadd.f32 %v255_v20, %v254_v12  ;;  %v183_v45 = vadd.f32 %v182_v23, %v181_v7  ;;  %v246_v46 = vadd.f32 %v245_v26, %v244_v10 }
  0xa4   :  { %v195_v25 = vadd.f32 %v194_v17, %v193_v9  ;;  %v200_v29 = vadd.f32 %v199_v21, %v198_v13  ;;  %v190_v47 = vadd.f32 %v189_v27, %v188_v11  ;;  %v292_v50 = vsel %vm279_vm2, %v225_v30, %v291_v40 }
  0xa5   :  { %v252_v32 = vrot.slane %v251_v24, 1  ;;  %v257_v36 = vrot.slane %v256_v28, 2  ;;  %v280_v51 = vsel %vm279_vm2, %v169_v31, %v278_v41  ;;  %v293_v54 = vsel %vm281_vm3, %v232_v34, %v292_v50 }
  0xa6   :  { %v196_v33 = vrot.slane %v195_v25, 1  ;;  %v201_v37 = vrot.slane %v200_v29, 2  ;;  %v282_v38 = vsel %vm281_vm3, %v176_v35, %v280_v51  ;;  %v294_v39 = vsel %vm283_vm4, %v239_v44, %v293_v54 }
  0xa7   :  { %v258_v48 = vadd.f32 %v257_v36, %v256_v28  ;;  %v253_v52 = vadd.f32 %v252_v32, %v251_v24  ;;  %v284_v43 = vsel %vm283_vm4, %v183_v45, %v282_v38  ;;  %v295_v56 = vsel %vm285_vm5, %v246_v46, %v294_v39 }
  0xa8   :  { %v202_v49 = vadd.f32 %v201_v37, %v200_v29  ;;  %v197_v53 = vadd.f32 %v196_v33, %v195_v25  ;;  %v286_v57 = vsel %vm285_vm5, %v190_v47, %v284_v43 }
  0xa9   :  { %v259_v42 = vrot.slane %v258_v48, 1  ;;  %v296_v62 = vsel %vm287_vm6, %v253_v52, %v295_v56 }
  0xaa   :  { %v203_v55 = vrot.slane %v202_v49, 1  ;;  %v288_v63 = vsel %vm287_vm6, %v197_v53, %v286_v57 }
  0xab   :  { %v260_v59 = vadd.f32 %v259_v42, %v258_v48 }
  0xac   :  { %v204_v61 = vadd.f32 %v203_v55, %v202_v49 }
  0xad   :  { %v297_v0 = vsel %vm289_vm7, %v260_v59, %v296_v62 }
  0xae   :  { %v290_v1 = vsel %vm289_vm7, %v204_v61, %v288_v63  ;;  %v301_v2 = vadd.f32 %v297_v0, %v51_v58 }
  0xaf   :  { %v300_v3 = vadd.f32 %v290_v1, %v50_v60 }
  0xb0   :  { %303 = vst.msk [vmem:[#allocation2 + $0x8] sm:$0xff] %vm15_vm0, %v301_v2 }
  0xb1   :  { %302 = vst.msk [vmem:[#allocation2] sm:$0xff] %vm15_vm0, %v300_v3 }
  0xb7   :  { %v308_v4 = vld [vmem:[#allocation2 + $0x8] sm:$0xff] }
  0xb8   :  { %v307_v5 = vld [vmem:[#allocation2] sm:$0xff]  ;;  %310 = vst.msk [vmem:[%s486_s2 + $0x8] sm:$0xff] %vm15_vm0, %v308_v4 }
  0xb9   :  { %309 = vst.msk [vmem:[%s486_s2] sm:$0xff] %vm15_vm0, %v307_v5 }

</bundles_post_ra>
